<compile_context>
chip_gen: v6e
topology: v6e:2x2x1
jax: 0.10.0
libtpu: 0.0.40
codegen_flags: <defaults>
</compile_context>

<pallas_src>
import functools

import jax
import jax.numpy as jnp
from jax.experimental import pallas as pl
from jax.experimental.pallas import tpu as pltpu


def _elementwise_kernel(mask_dtype, x_ref,
                        add_ref, mul_ref, sub_ref, div_ref,
                        gt_ref, lt_ref, eq_ref):
    x = x_ref[...]
    add_ref[...] = x + 2.0
    mul_ref[...] = x * 3.0
    sub_ref[...] = x - 1.0
    div_ref[...] = x * 0.5          # exact for binary floats; same as x / 2
    gt_ref[...] = (x > 1.0).astype(mask_dtype)
    lt_ref[...] = (x < 5.0).astype(mask_dtype)
    eq_ref[...] = (x == 2.0).astype(mask_dtype)


def _probe_kernel(x_ref, o_ref):
    o_ref[...] = x_ref[...] > 1.0


_BOOL_MASK_SUPPORTED = None


def _bool_mask_refs_supported():
    """Probe once whether this Pallas TPU lowering handles bool output refs."""
    global _BOOL_MASK_SUPPORTED
    if _BOOL_MASK_SUPPORTED is None:
        try:
            x = jnp.arange(8 * 128, dtype=jnp.float32).reshape(8, 128)
            got = pl.pallas_call(
                _probe_kernel,
                out_shape=jax.ShapeDtypeStruct((8, 128), jnp.bool_),
            )(x)
            _BOOL_MASK_SUPPORTED = bool(jnp.array_equal(got, x > 1.0))
        except Exception:
            _BOOL_MASK_SUPPORTED = False
    return _BOOL_MASK_SUPPORTED


def _build_call(rows, cols, tile_rows, dtype, mask_dtype):
    n = rows * cols
    itemsize = jnp.dtype(dtype).itemsize
    spec = pl.BlockSpec((tile_rows, cols), lambda i: (i, 0))
    out_shapes = tuple([jax.ShapeDtypeStruct((rows, cols), dtype)] * 4 +
                       [jax.ShapeDtypeStruct((rows, cols), mask_dtype)] * 3)
    return pl.pallas_call(
        functools.partial(_elementwise_kernel, mask_dtype),
        out_shape=out_shapes,
        grid_spec=pltpu.PrefetchScalarGridSpec(
            num_scalar_prefetch=0,
            grid=(pl.cdiv(rows, tile_rows),),
            in_specs=[spec],
            out_specs=[spec] * 7,
        ),
        compiler_params=pltpu.CompilerParams(
            dimension_semantics=("parallel",)),
        cost_estimate=pl.CostEstimate(
            flops=7 * n,
            transcendentals=0,
            # 1 float in + 4 float outs + 3 one-byte mask outs
            bytes_accessed=n * (5 * itemsize + 3)),
    )


def pt_module_forward(x, *, target_block_elems=128 * 1024):
    """Pallas equivalent of PtModule.forward. x: float array of any shape."""
    orig_shape = x.shape
    dtype = x.dtype
    n = x.size

    # Lane-dense 2-D view; only pad when element count isn't a multiple of cols.
    cols = 512 if n % 512 == 0 else 128
    pad = (-n) % cols
    x_flat = jnp.ravel(x)
    if pad:
        x_flat = jnp.pad(x_flat, (0, pad))
    rows = (n + pad) // cols
    x2d = x_flat.reshape(rows, cols)

    # Tile sizing: big blocks amortize per-step overhead; rows multiple of 32
    # keep the 1-byte mask tiles full-vreg; >=2 grid steps feed both v7x TCs.
    desired = max(32, target_block_elems // cols)     # 1024x128 or 256x512 equiv
    if rows <= 64:
        tile_rows = rows                              # tiny input: one full-extent block
    else:
        tile_rows = min(desired, pl.cdiv(rows, 2))
        tile_rows = max(32, (tile_rows // 32) * 32)

    mask_dtype = jnp.bool_ if _bool_mask_refs_supported() else jnp.int8
    outs = _build_call(rows, cols, tile_rows, dtype, mask_dtype)(x2d)

    def restore(a, to_bool=False):
        if pad:
            a = a.reshape(-1)[:n]
        a = a.reshape(orig_shape)
        if to_bool and a.dtype != jnp.bool_:
            a = a.astype(jnp.bool_)                   # only on the int8 fallback path
        return a

    add_r, mul_r, sub_r, div_r, gt_r, lt_r, eq_r = outs
    return (restore(add_r), restore(mul_r), restore(sub_r), restore(div_r),
            restore(gt_r, True), restore(lt_r, True), restore(eq_r, True))


if __name__ == "__main__":
    key = jax.random.PRNGKey(0)
    # Small NCHW input consistent with a generic image-tensor forward.
    x = jax.random.normal(key, (2, 4, 16, 16), dtype=jnp.float32) * 3.0
    # Make sure the `== 2` branch has at least one hit.
    x = x.at[0, 0, 0, 0].set(2.0)

    outs = jax.block_until_ready(pt_module_forward(x))

    # Reference check in plain JAX.
    ref = (x + 2, x * 3, x - 1, x / 2, x > 1, x < 5, x == 2)
    for got, want in zip(outs, ref):
        assert got.shape == want.shape and got.dtype == want.dtype, (got.shape, got.dtype)
        if got.dtype == jnp.bool_:
            assert bool(jnp.all(got == want))
        else:
            assert bool(jnp.allclose(got, want, atol=1e-6))

    print("KERNEL_OK")
</pallas_src>

<mosaic_0001>
module attributes {stable_mosaic.version = 11 : i64} {
  func.func @_probe_kernel(%arg0: memref<8x128xf32, #tpu.memory_space<vmem>>, %arg1: memref<8x128xi32, #tpu.memory_space<vmem>>) attributes {dimension_semantics = [], scalar_prefetch = 0 : i64, scratch_operands = 0 : i64, tpu.core_type = #tpu.core_type<tc>} {
    %c0 = arith.constant 0 : index
    %c0_0 = arith.constant 0 : index
    %0 = vector.load %arg0[%c0, %c0_0] : memref<8x128xf32, #tpu.memory_space<vmem>>, vector<8x128xf32>
    %cst = arith.constant 1.000000e+00 : f32
    %1 = vector.broadcast %cst : f32 to vector<8x128xf32>
    %2 = arith.cmpf ogt, %0, %1 : vector<8x128xf32>
    %c0_1 = arith.constant 0 : index
    %c0_2 = arith.constant 0 : index
    %3 = vector.load %arg1[%c0_1, %c0_2] : memref<8x128xi32, #tpu.memory_space<vmem>>, vector<8x128xi32>
    %4 = arith.extui %2 : vector<8x128xi1> to vector<8x128xi32>
    %cst_3 = arith.constant dense<0> : vector<8x128xi32>
    %5 = arith.cmpi ne, %3, %cst_3 : vector<8x128xi32>
    tpu.vector_store %arg1[%c0_1, %c0_2], %4 {strides = array<i32>} : memref<8x128xi32, #tpu.memory_space<vmem>>, vector<8x128xi32>,
    return
  }
}

module attributes {stable_mosaic.version = 11 : i64} {
  func.func @_elementwise_kernel(%arg0: i32, %arg1: memref<4x512xf32, #tpu.memory_space<vmem>>, %arg2: memref<4x512xf32, #tpu.memory_space<vmem>>, %arg3: memref<4x512xf32, #tpu.memory_space<vmem>>, %arg4: memref<4x512xf32, #tpu.memory_space<vmem>>, %arg5: memref<4x512xf32, #tpu.memory_space<vmem>>, %arg6: memref<4x512xi8, #tpu.memory_space<vmem>>, %arg7: memref<4x512xi8, #tpu.memory_space<vmem>>, %arg8: memref<4x512xi8, #tpu.memory_space<vmem>>) attributes {dimension_semantics = [#tpu.dimension_semantics<parallel>], iteration_bounds = array<i64: 1>, scalar_prefetch = 0 : i64, scratch_operands = 0 : i64, tpu.core_type = #tpu.core_type<tc>, window_params = [{transform_indices = @transform_0, window_bounds = array<i64: 4, 512>}, {transform_indices = @transform_1, window_bounds = array<i64: 4, 512>}, {transform_indices = @transform_2, window_bounds = array<i64: 4, 512>}, {transform_indices = @transform_3, window_bounds = array<i64: 4, 512>}, {transform_indices = @transform_4, window_bounds = array<i64: 4, 512>}, {transform_indices = @transform_5, window_bounds = array<i64: 4, 512>}, {transform_indices = @transform_6, window_bounds = array<i64: 4, 512>}, {transform_indices = @transform_7, window_bounds = array<i64: 4, 512>}]} {
    %c0 = arith.constant 0 : index
    %c0_0 = arith.constant 0 : index
    %0 = vector.load %arg1[%c0, %c0_0] : memref<4x512xf32, #tpu.memory_space<vmem>>, vector<4x512xf32>
    %cst = arith.constant 2.000000e+00 : f32
    %1 = vector.broadcast %cst : f32 to vector<4x512xf32>
    %2 = arith.addf %0, %1 : vector<4x512xf32>
    %c0_1 = arith.constant 0 : index
    %c0_2 = arith.constant 0 : index
    %3 = vector.load %arg2[%c0_1, %c0_2] : memref<4x512xf32, #tpu.memory_space<vmem>>, vector<4x512xf32>
    tpu.vector_store %arg2[%c0_1, %c0_2], %2 {strides = array<i32>} : memref<4x512xf32, #tpu.memory_space<vmem>>, vector<4x512xf32>,
    %cst_3 = arith.constant 3.000000e+00 : f32
    %4 = vector.broadcast %cst_3 : f32 to vector<4x512xf32>
    %5 = arith.mulf %0, %4 : vector<4x512xf32>
    %c0_4 = arith.constant 0 : index
    %c0_5 = arith.constant 0 : index
    %6 = vector.load %arg3[%c0_4, %c0_5] : memref<4x512xf32, #tpu.memory_space<vmem>>, vector<4x512xf32>
    tpu.vector_store %arg3[%c0_4, %c0_5], %5 {strides = array<i32>} : memref<4x512xf32, #tpu.memory_space<vmem>>, vector<4x512xf32>,
    %cst_6 = arith.constant 1.000000e+00 : f32
    %7 = vector.broadcast %cst_6 : f32 to vector<4x512xf32>
    %8 = arith.subf %0, %7 : vector<4x512xf32>
    %c0_7 = arith.constant 0 : index
    %c0_8 = arith.constant 0 : index
    %9 = vector.load %arg4[%c0_7, %c0_8] : memref<4x512xf32, #tpu.memory_space<vmem>>, vector<4x512xf32>
    tpu.vector_store %arg4[%c0_7, %c0_8], %8 {strides = array<i32>} : memref<4x512xf32, #tpu.memory_space<vmem>>, vector<4x512xf32>,
    %cst_9 = arith.constant 5.000000e-01 : f32
    %10 = vector.broadcast %cst_9 : f32 to vector<4x512xf32>
    %11 = arith.mulf %0, %10 : vector<4x512xf32>
    %c0_10 = arith.constant 0 : index
    %c0_11 = arith.constant 0 : index
    %12 = vector.load %arg5[%c0_10, %c0_11] : memref<4x512xf32, #tpu.memory_space<vmem>>, vector<4x512xf32>
    tpu.vector_store %arg5[%c0_10, %c0_11], %11 {strides = array<i32>} : memref<4x512xf32, #tpu.memory_space<vmem>>, vector<4x512xf32>,
    %cst_12 = arith.constant 1.000000e+00 : f32
    %13 = vector.broadcast %cst_12 : f32 to vector<4x512xf32>
    %14 = arith.cmpf ogt, %0, %13 : vector<4x512xf32>
    %15 = arith.extui %14 : vector<4x512xi1> to vector<4x512xi8>
    %c0_13 = arith.constant 0 : index
    %c0_14 = arith.constant 0 : index
    %16 = vector.load %arg6[%c0_13, %c0_14] : memref<4x512xi8, #tpu.memory_space<vmem>>, vector<4x512xi8>
    tpu.vector_store %arg6[%c0_13, %c0_14], %15 {strides = array<i32>} : memref<4x512xi8, #tpu.memory_space<vmem>>, vector<4x512xi8>,
    %cst_15 = arith.constant 5.000000e+00 : f32
    %17 = vector.broadcast %cst_15 : f32 to vector<4x512xf32>
    %18 = arith.cmpf olt, %0, %17 : vector<4x512xf32>
    %19 = arith.extui %18 : vector<4x512xi1> to vector<4x512xi8>
    %c0_16 = arith.constant 0 : index
    %c0_17 = arith.constant 0 : index
    %20 = vector.load %arg7[%c0_16, %c0_17] : memref<4x512xi8, #tpu.memory_space<vmem>>, vector<4x512xi8>
    tpu.vector_store %arg7[%c0_16, %c0_17], %19 {strides = array<i32>} : memref<4x512xi8, #tpu.memory_space<vmem>>, vector<4x512xi8>,
    %cst_18 = arith.constant 2.000000e+00 : f32
    %21 = vector.broadcast %cst_18 : f32 to vector<4x512xf32>
    %22 = arith.cmpf oeq, %0, %21 : vector<4x512xf32>
    %23 = arith.extui %22 : vector<4x512xi1> to vector<4x512xi8>
    %c0_19 = arith.constant 0 : index
    %c0_20 = arith.constant 0 : index
    %24 = vector.load %arg8[%c0_19, %c0_20] : memref<4x512xi8, #tpu.memory_space<vmem>>, vector<4x512xi8>
    tpu.vector_store %arg8[%c0_19, %c0_20], %23 {strides = array<i32>} : memref<4x512xi8, #tpu.memory_space<vmem>>, vector<4x512xi8>,
    return
  }
  func.func @transform_0(%arg0: i32) -> (i32, i32) {
    %c0_i32 = arith.constant 0 : i32
    %c0_i32_0 = arith.constant 0 : i32
    return %arg0, %c0_i32 : i32, i32
  }
  func.func @transform_1(%arg0: i32) -> (i32, i32) {
    %c0_i32 = arith.constant 0 : i32
    %c0_i32_0 = arith.constant 0 : i32
    return %arg0, %c0_i32 : i32, i32
  }
  func.func @transform_2(%arg0: i32) -> (i32, i32) {
    %c0_i32 = arith.constant 0 : i32
    %c0_i32_0 = arith.constant 0 : i32
    return %arg0, %c0_i32 : i32, i32
  }
  func.func @transform_3(%arg0: i32) -> (i32, i32) {
    %c0_i32 = arith.constant 0 : i32
    %c0_i32_0 = arith.constant 0 : i32
    return %arg0, %c0_i32 : i32, i32
  }
  func.func @transform_4(%arg0: i32) -> (i32, i32) {
    %c0_i32 = arith.constant 0 : i32
    %c0_i32_0 = arith.constant 0 : i32
    return %arg0, %c0_i32 : i32, i32
  }
  func.func @transform_5(%arg0: i32) -> (i32, i32) {
    %c0_i32 = arith.constant 0 : i32
    %c0_i32_0 = arith.constant 0 : i32
    return %arg0, %c0_i32 : i32, i32
  }
  func.func @transform_6(%arg0: i32) -> (i32, i32) {
    %c0_i32 = arith.constant 0 : i32
    %c0_i32_0 = arith.constant 0 : i32
    return %arg0, %c0_i32 : i32, i32
  }
  func.func @transform_7(%arg0: i32) -> (i32, i32) {
    %c0_i32 = arith.constant 0 : i32
    %c0_i32_0 = arith.constant 0 : i32
    return %arg0, %c0_i32 : i32, i32
  }
}

</mosaic_0001>

<bundles_post_ra>
// kernel: tpu_custom_call.1
= control target key start
LH: loop header
LB: loop body
LE: loop exit
PB: predicated region body
PF: predicated region fallthrough
CT: control target
= control target key end

     0   :  { %6 = vsyncpa [#allocation3], 0  ;;  %s53_s6 = smov [#allocation2]   ;;  %s71_s0 = inlined_call_operand.hbm [shape: f32[8,128], index: 0, kind: input, shape index: {}]   ;;  %s72_s1 = inlined_call_operand.vmem [shape: s32[8,128], index: 1, kind: output, shape index: {}]  }
   0x1   :  { %s13_s7 = sshll.u32 %s53_s6, 4  ;;  %s14_s7 = int_to_ptr.vmem [resolvable:$true] %s13_s7 }
   0x2   :  { %s39_s8 = scalar_lea.vmem %s14_s7, 128  ;;  %p44_p1 = scmp.lt.s32.totalorder %s14_s7, %s14_s7 }
   0x3   :  { %p40_p0 = scmp.ne.s32.totalorder %s14_s7, %s39_s8  ;;  %p45_p2 = scmp.lt.s32.totalorder %s39_s8, %s39_s8 }
   0x5   :  { %p46_p3 = por %p45_p2, %p44_p1 }
   0x7   :  { %p47_p4 = pnand %p46_p3, %p40_p0 }
   0x9   :  { %50 = shalt.err (!%p47_p4)
}
   0xa   :  { %16 = dma.hbm_to_vmem [thread:$0]  %s71_s0, 128, %s14_s7, [#allocation3]  }
   0xb   :  { %51 = dma.done.wait [#allocation3], 128  }
   0xc   :  { %52 = vsyncadd [#allocation3], 4294967168  ;;  %v20_v0 = vld [vmem:[#allocation2] sm:$0xff]  ;;  %v54_v1 = vmov 0  }
   0xd   :  { %vm21_vm0 = vcmp.gt.f32.partialorder %v20_v0, 1.0 }
   0xe   :  { %v22_v2 = vsel %vm21_vm0, 1, %v54_v1 }
   0xf   :  { %23 = vst [vmem:[%s72_s1] sm:$0xff] %v22_v2 }
  0x10   :  { %28 = vsyncpa [#allocation3], 1 }

// kernel: tpu_custom_call.1
= control target key start
LH: loop header
LB: loop body
LE: loop exit
PB: predicated region body
PF: predicated region fallthrough
CT: control target
= control target key end

     0   :  { %13 = vsyncpa [#allocation3], 0  ;;  %s670_s0 = inlined_call_operand.hbm [shape: f32[4,512], index: 0, kind: input, shape index: {}]   ;;  %s671_s1 = inlined_call_operand.hbm [shape: f32[4,512], index: 1, kind: output, shape index: {0}]   ;;  %s672_s2 = inlined_call_operand.hbm [shape: f32[4,512], index: 2, kind: output, shape index: {1}]   ;;  %s673_s3 = inlined_call_operand.hbm [shape: f32[4,512], index: 3, kind: output, shape index: {2}]   ;;  %s674_s4 = inlined_call_operand.hbm [shape: f32[4,512], index: 4, kind: output, shape index: {3}]   ;;  %s675_s5 = inlined_call_operand.hbm [shape: s8[4,512], index: 5, kind: output, shape index: {4}]   ;;  %s676_s6 = inlined_call_operand.hbm [shape: s8[4,512], index: 6, kind: output, shape index: {5}]   ;;  %s677_s7 = inlined_call_operand.hbm [shape: s8[4,512], index: 7, kind: output, shape index: {6}]  }
   0x1   :  { %14 = vsyncpa [#allocation4], 0 }
   0x2   :  { %15 = vsyncpa [#allocation7], 0 }
   0x3   :  { %16 = vsyncpa [#allocation10], 0 }
   0x4   :  { %17 = vsyncpa [#allocation13], 0  ;;  %s527_s24 = smov [#allocation2]  }
   0x5   :  { %s24_s25 = sshll.u32 %s527_s24, 4  ;;  %s25_s25 = int_to_ptr.vmem [resolvable:$true] %s24_s25 }
   0x6   :  { %s365_s26 = scalar_lea.vmem %s25_s25, 256  ;;  %p370_p1 = scmp.lt.s32.totalorder %s25_s25, %s25_s25 }
   0x7   :  { %p366_p0 = scmp.ne.s32.totalorder %s25_s25, %s365_s26  ;;  %p371_p2 = scmp.lt.s32.totalorder %s365_s26, %s365_s26 }
   0x9   :  { %p372_p3 = por %p371_p2, %p370_p1 }
   0xb   :  { %p373_p4 = pnand %p372_p3, %p366_p0 }
   0xd   :  { %376 = shalt.err (!%p373_p4)
}
   0xe   :  { %27 = dma.hbm_to_vmem [thread:$0]  %s670_s0, 256, %s25_s25, [#allocation3]  }
   0xf   :  { %517 = dma.done.wait [#allocation3], 256  }
  0x10   :  { %518 = vsyncadd [#allocation3], 4294967040  ;;  %v528_v0 = vmov 1966171168   ;;  %v62_v2 = vlaneseq  ;;  %s529_s29 = smov [#allocation6]   ;;  %s530_s8 = smov [#allocation9]  }
  0x11   :  { %v580_v1 = vunpack.c.l.s4 %v528_v0  ;;  %s262_s30 = sshll.u32 %s529_s29, 4  ;;  %s282_s9 = sshll.u32 %s530_s8, 4  ;;  %v33_v3 = vld [vmem:[#allocation2] sm:$0xff]  ;;  %v34_v4 = vld [vmem:[#allocation2 + $0x8] sm:$0xff]  ;;  %v533_v13 = vmov 0   ;;  %s583_s30 = int_to_ptr.vmem [resolvable:$true] %s262_s30  ;;  %s585_s9 = int_to_ptr.vmem [resolvable:$true] %s282_s9 }
  0x12   :  { %v63_v6 = vshrl.u32 %v62_v2, 7  ;;  %s531_s10 = smov [#allocation5]   ;;  %s532_s12 = smov [#allocation8]   ;;  %v39_v7 = vmul.f32 3.0, %v33_v3  ;;  %v40_v8 = vmul.f32 3.0, %v34_v4  ;;  %v47_v9 = vmul.f32 0.5, %v33_v3 }
  0x13   :  { %v61_v5 = vunpack.c.0.s8 %v580_v1  ;;  %s252_s11 = sshll.u32 %s531_s10, 4  ;;  %s272_s13 = sshll.u32 %s532_s12, 4  ;;  %v48_v10 = vmul.f32 0.5, %v34_v4  ;;  %vm116_vm0 = vcmp.lt.f32.partialorder %v33_v3, 5.0  ;;  %vm117_vm1 = vcmp.lt.f32.partialorder %v34_v4, 5.0  ;;  %s589_s11 = int_to_ptr.vmem [resolvable:$true] %s252_s11  ;;  %s591_s13 = int_to_ptr.vmem [resolvable:$true] %s272_s13 }
  0x14   :  { %v35_v11 = vadd.f32 2.0, %v33_v3  ;;  %v36_v12 = vadd.f32 2.0, %v34_v4  ;;  %41 = vst [vmem:[#allocation6] sm:$0xff] %v39_v7  ;;  %42 = vst [vmem:[#allocation6 + $0x8] sm:$0xff] %v40_v8  ;;  %v118_v14 = vsel %vm116_vm0, 1, %v533_v13  ;;  %v119_v15 = vsel %vm117_vm1, 1, %v533_v13  ;;  %p382_p6 = scmp.lt.s32.totalorder %s583_s30, %s583_s30 }
  0x15   :  { %49 = vst [vmem:[#allocation9] sm:$0xff] %v47_v9  ;;  %50 = vst [vmem:[#allocation9 + $0x8] sm:$0xff] %v48_v10  ;;  %v342_v16 = vadd.f32 -1.0, %v33_v3  ;;  %v343_v17 = vadd.f32 -1.0, %v34_v4  ;;  %v120_v18 = vpack.c.b16 %v119_v15, %v118_v14  ;;  %vm51_vm2 = vcmp.gt.f32.partialorder %v33_v3, 1.0  ;;  %s377_s0 = scalar_lea.vmem %s583_s30, 256 }
  0x16   :  { %37 = vst [vmem:[#allocation5] sm:$0xff] %v35_v11  ;;  %38 = vst [vmem:[#allocation5 + $0x8] sm:$0xff] %v36_v12  ;;  %vm52_vm3 = vcmp.gt.f32.partialorder %v34_v4, 1.0  ;;  %vm181_vm4 = vcmp.eq.f32.partialorder %v33_v3, 2.0  ;;  %p378_p5 = scmp.ne.s32.totalorder %s583_s30, %s377_s0  ;;  %p383_p7 = scmp.lt.s32.totalorder %s377_s0, %s377_s0 }
  0x18   :  { %p384_p8 = por %p383_p7, %p382_p6 }
  0x1a   :  { %p385_p9 = pnand %p384_p8, %p378_p5 }
  0x1c   :  { %388 = shalt.err (!%p385_p9)
}
  0x1d   :  { %265 = dma.vmem_to_hbm [thread:$0]  %s583_s30, 256, %s672_s2, [#allocation7]   ;;  %45 = vst [vmem:[#allocation8] sm:$0xff] %v342_v16  ;;  %46 = vst [vmem:[#allocation8 + $0x8] sm:$0xff] %v343_v17  ;;  %v53_v19 = vsel %vm51_vm2, 1, %v533_v13  ;;  %v54_v20 = vsel %vm52_vm3, 1, %v533_v13 }
  0x1e   :  { %vm182_vm5 = vcmp.eq.f32.partialorder %v34_v4, 2.0  ;;  %v183_v21 = vsel %vm181_vm4, 1, %v533_v13  ;;  %s397_s16 = scalar_lea.vmem %s585_s9, 256  ;;  %p402_p11 = scmp.lt.s32.totalorder %s585_s9, %s585_s9 }
  0x1f   :  { %p398_p10 = scmp.ne.s32.totalorder %s585_s9, %s397_s16  ;;  %p403_p12 = scmp.lt.s32.totalorder %s397_s16, %s397_s16 }
  0x21   :  { %p404_p13 = por %p403_p12, %p402_p11 }
  0x23   :  { %p405_p0 = pnand %p404_p13, %p398_p10 }
  0x25   :  { %408 = shalt.err (!%p405_p0)
}
  0x26   :  { %285 = dma.vmem_to_hbm [thread:$0]  %s585_s9, 256, %s674_s4, [#allocation10]   ;;  %v612_v22 = vsub.s32 %v61_v5, %v63_v6  ;;  %v121_v23 = vpack.c.b8 %v120_v18, %v120_v18  ;;  %v55_v24 = vpack.c.b16 %v54_v20, %v53_v19  ;;  %v184_v25 = vsel %vm182_vm5, 1, %v533_v13 }
  0x27   :  { %s417_s2 = scalar_lea.vmem %s589_s11, 256  ;;  %p422_p2 = scmp.lt.s32.totalorder %s589_s11, %s589_s11 }
  0x28   :  { %p418_p1 = scmp.ne.s32.totalorder %s589_s11, %s417_s2  ;;  %p423_p3 = scmp.lt.s32.totalorder %s417_s2, %s417_s2 }
  0x2a   :  { %p424_p4 = por %p423_p3, %p422_p2 }
  0x2c   :  { %p425_p5 = pnand %p424_p4, %p418_p1 }
  0x2e   :  { %428 = shalt.err (!%p425_p5)
}
  0x2f   :  { %255 = dma.vmem_to_hbm [thread:$0]  %s589_s11, 256, %s671_s1, [#allocation4]   ;;  %v185_v26 = vpack.c.b16 %v184_v25, %v183_v21 }
  0x30   :  { %s437_s4 = scalar_lea.vmem %s591_s13, 256  ;;  %p442_p7 = scmp.lt.s32.totalorder %s591_s13, %s591_s13 }
  0x31   :  { %p438_p6 = scmp.ne.s32.totalorder %s591_s13, %s437_s4  ;;  %p443_p8 = scmp.lt.s32.totalorder %s437_s4, %s437_s4 }
  0x33   :  { %p444_p9 = por %p443_p8, %p442_p7 }
  0x35   :  { %p445_p10 = pnand %p444_p9, %p438_p6 }
  0x37   :  { %448 = shalt.err (!%p445_p10)
}
  0x38   :  { %275 = dma.vmem_to_hbm [thread:$0]  %s591_s13, 256, %s673_s3, [#allocation7]   ;;  %vm122_vm6 = vnez %v121_v23  ;;  %v56_v27 = vpack.c.b8 %v55_v24, %v55_v24  ;;  %v186_v29 = vpack.c.b8 %v185_v26, %v185_v26 }
  0x39   :  { %v123_v28 = vsel %vm122_vm6, 16843009, %v533_v13  ;;  %s534_s1 = smov [#allocation12]   ;;  %s535_s23 = smov [#allocation11]  }
  0x3a   :  { %v130_v30 = vrot.slane %v123_v28, %v612_v22  ;;  %vm57_vm7 = vnez %v56_v27  ;;  %vm187_vm8 = vnez %v186_v29  ;;  %s302_s3 = sshll.u32 %s534_s1, 4  ;;  %s292_s24 = sshll.u32 %s535_s23, 4  ;;  %s303_s3 = int_to_ptr.vmem [resolvable:$true] %s302_s3  ;;  %s293_s24 = int_to_ptr.vmem [resolvable:$true] %s292_s24 }
  0x3b   :  { %v58_v31 = vsel %vm57_vm7, 16843009, %v533_v13  ;;  %v188_v35 = vsel %vm187_vm8, 16843009, %v533_v13  ;;  %s457_s25 = scalar_lea.vmem %s303_s3, 64  ;;  %p462_p12 = scmp.lt.s32.totalorder %s303_s3, %s303_s3 }
  0x3c   :  { %v131_v32 = vcombine.high %v130_v30, %v130_v30  ;;  %v138_v33 = vrot.slane %v130_v30, %v612_v22  ;;  %v65_v34 = vrot.slane %v58_v31, %v612_v22  ;;  %v195_v36 = vrot.slane %v188_v35, %v612_v22  ;;  %p458_p11 = scmp.ne.s32.totalorder %s303_s3, %s457_s25  ;;  %p463_p13 = scmp.lt.s32.totalorder %s457_s25, %s457_s25 }
  0x3e   :  { %v145_v37 = vrot.slane %v131_v32, %v612_v22  ;;  %v146_v38 = vcombine.high %v138_v33, %v138_v33  ;;  %vm148_vm9 = vnez %v138_v33  ;;  %v66_v39 = vcombine.high %v65_v34, %v65_v34  ;;  %p464_p0 = por %p463_p13, %p462_p12 }
  0x3f   :  { %v152_v40 = vsel %vm148_vm9, 16843009, %v533_v13  ;;  %v73_v41 = vrot.slane %v65_v34, %v612_v22  ;;  %v196_v42 = vcombine.high %v195_v36, %v195_v36  ;;  %v203_v43 = vrot.slane %v195_v36, %v612_v22 }
  0x40   :  { %v147_v44 = vcombine.high %v145_v37, %v145_v37  ;;  %vm149_vm10 = vnez %v145_v37  ;;  %vm150_vm11 = vnez %v146_v38  ;;  %v80_v45 = vrot.slane %v66_v39, %v612_v22  ;;  %p465_p1 = pnand %p464_p0, %p458_p11 }
  0x41   :  { %v153_v46 = vsel %vm149_vm10, 16843009, %v533_v13  ;;  %v154_v47 = vsel %vm150_vm11, 16843009, %v533_v13  ;;  %v81_v48 = vcombine.high %v73_v41, %v73_v41  ;;  %vm83_vm12 = vnez %v73_v41 }
  0x42   :  { %vm151_vm13 = vnez %v147_v44  ;;  %v156_v49 = vcombine.low %v152_v40, %v153_v46  ;;  %v82_v50 = vcombine.high %v80_v45, %v80_v45  ;;  %vm84_vm14 = vnez %v80_v45 }
  0x43   :  { %v155_v51 = vsel %vm151_vm13, 16843009, %v533_v13  ;;  %vm85_vm15 = vnez %v81_v48  ;;  %v87_v52 = vsel %vm83_vm12, 16843009, %v533_v13  ;;  %v88_v53 = vsel %vm84_vm14, 16843009, %v533_v13 }
  0x44   :  { %v157_v54 = vcombine.low %v154_v47, %v155_v51  ;;  %v164_v55 = vrot.slane %v156_v49, %v612_v22  ;;  %vm86_vm0 = vnez %v82_v50  ;;  %v89_v56 = vsel %vm85_vm15, 16843009, %v533_v13 }
  0x45   :  { %v90_v57 = vsel %vm86_vm0, 16843009, %v533_v13  ;;  %v91_v58 = vcombine.low %v87_v52, %v88_v53  ;;  %v210_v59 = vrot.slane %v196_v42, %v612_v22  ;;  %v211_v60 = vcombine.high %v203_v43, %v203_v43 }
  0x46   :  { %v171_v61 = vrot.slane %v157_v54, %v612_v22  ;;  %v92_v62 = vcombine.low %v89_v56, %v90_v57  ;;  %vm213_vm1 = vnez %v203_v43 }
  0x47   :  { %v99_v63 = vrot.slane %v91_v58, %v612_v22  ;;  %v212_v0 = vcombine.high %v210_v59, %v210_v59  ;;  %vm214_vm2 = vnez %v210_v59  ;;  %vm215_vm3 = vnez %v211_v60 }
  0x48   :  { %v172_v1 = vcombine.low %v164_v55, %v171_v61  ;;  %v106_v2 = vrot.slane %v92_v62, %v612_v22  ;;  %v217_v3 = vsel %vm213_vm1, 16843009, %v533_v13  ;;  %v218_v4 = vsel %vm214_vm2, 16843009, %v533_v13 }
  0x49   :  { %vm216_vm4 = vnez %v212_v0  ;;  %v219_v5 = vsel %vm215_vm3, 16843009, %v533_v13  ;;  %v221_v6 = vcombine.low %v217_v3, %v218_v4 }
  0x4a   :  { %345 = vst.sshfl [vmem:[#allocation12] sm:$0x55 pattern:$0x73625140] %v172_v1  ;;  %v107_v7 = vcombine.low %v99_v63, %v106_v2  ;;  %v220_v8 = vsel %vm216_vm4, 16843009, %v533_v13 }
  0x4b   :  { %v222_v9 = vcombine.low %v219_v5, %v220_v8  ;;  %v229_v10 = vrot.slane %v221_v6, %v612_v22 }
  0x4c   :  { %468 = shalt.err (!%p465_p1)
}
  0x4d   :  { %305 = dma.vmem_to_hbm [thread:$0]  %s303_s3, 64, %s676_s6, [#allocation13]   ;;  %344 = vst.sshfl [vmem:[#allocation11] sm:$0x55 pattern:$0x73625140] %v107_v7  ;;  %v236_v11 = vrot.slane %v222_v9, %v612_v22 }
  0x4e   :  { %s536_s28 = smov [#allocation14]   ;;  %s477_s30 = scalar_lea.vmem %s293_s24, 64 }
  0x4f   :  { %s312_s29 = sshll.u32 %s536_s28, 4  ;;  %p478_p2 = scmp.ne.s32.totalorder %s293_s24, %s477_s30  ;;  %s313_s29 = int_to_ptr.vmem [resolvable:$true] %s312_s29 }
  0x50   :  { %p482_p3 = scmp.lt.s32.totalorder %s293_s24, %s293_s24  ;;  %p483_p4 = scmp.lt.s32.totalorder %s477_s30, %s477_s30 }
  0x52   :  { %p484_p5 = por %p483_p4, %p482_p3 }
  0x54   :  { %p485_p6 = pnand %p484_p5, %p478_p2 }
  0x56   :  { %488 = shalt.err (!%p485_p6)
}
  0x57   :  { %295 = dma.vmem_to_hbm [thread:$0]  %s293_s24, 64, %s675_s5, [#allocation10]   ;;  %v237_v12 = vcombine.low %v229_v10, %v236_v11 }
  0x58   :  { %s497_s6 = scalar_lea.vmem %s313_s29, 64  ;;  %p502_p8 = scmp.lt.s32.totalorder %s313_s29, %s313_s29 }
  0x59   :  { %346 = vst.sshfl [vmem:[#allocation14] sm:$0x55 pattern:$0x73625140] %v237_v12  ;;  %p498_p7 = scmp.ne.s32.totalorder %s313_s29, %s497_s6  ;;  %p503_p9 = scmp.lt.s32.totalorder %s497_s6, %s497_s6 }
  0x5b   :  { %p504_p10 = por %p503_p9, %p502_p8 }
  0x5d   :  { %p505_p11 = pnand %p504_p10, %p498_p7 }
  0x5f   :  { %508 = shalt.err (!%p505_p11)
}
  0x60   :  { %315 = dma.vmem_to_hbm [thread:$0]  %s313_s29, 64, %s677_s7, [#allocation13]  }
  0x61   :  { %519 = dma.done.wait [#allocation4], 256  }
  0x62   :  { %520 = vsyncadd [#allocation4], 4294967040 }
  0x63   :  { %521 = dma.done.wait [#allocation7], 512  }
  0x64   :  { %522 = vsyncadd [#allocation7], 4294966784 }
  0x65   :  { %523 = dma.done.wait [#allocation10], 320  }
  0x66   :  { %524 = vsyncadd [#allocation10], 4294966976 }
  0x67   :  { %525 = dma.done.wait [#allocation13], 128  }
  0x68   :  { %526 = vsyncadd [#allocation13], 4294967168 }
  0x69   :  { %337 = vsyncpa [#allocation3], 1 }
  0x6a   :  { %338 = vsyncpa [#allocation4], 1 }
  0x6b   :  { %339 = vsyncpa [#allocation7], 1 }
  0x6c   :  { %340 = vsyncpa [#allocation10], 1 }
  0x6d   :  { %341 = vsyncpa [#allocation13], 1 }

</bundles_post_ra>
